<compile_context>
chip_gen: v7x
topology: tpu7x:2x2x1
jax: 0.10.0
libtpu: 0.0.40
codegen_flags: <defaults>
</compile_context>

<pallas_src>
import jax
import jax.numpy as jnp
from jax import lax
from jax.experimental import pallas as pl
from jax.experimental.pallas import tpu as pltpu


# ----------------------------------------------------------------------------
# helpers
# ----------------------------------------------------------------------------
def _round_up(x: int, m: int) -> int:
    return ((x + m - 1) // m) * m


def _choose_tile(n: int, tile_n: int) -> int:
    # lane-dense (multiple of 128) tile, capped at the padded table size
    return min(tile_n, _round_up(n, 128))


# ----------------------------------------------------------------------------
# Pallas kernels
# ----------------------------------------------------------------------------
def _make_pair_kernel(rank: int):
    """Fused score_o + score_s: one pass over the entity table.

    scores_o[b, n] = Re[(l_b * r_b) . conj(e_n)]   (ComplEx score_o form)
    scores_s[b, n] = Re[(t_b * conj(r_b)) . conj(e_n)]
    Both reduce to  q @ E^T  with q = [q_re | q_im] in R^{2*rank}.
    """
    def kernel(lhs_ref, rel_ref, rhs_ref, e_ref, o_ref):
        l = lhs_ref[...]
        r = rel_ref[...]
        t = rhs_ref[...]
        l_re, l_im = l[:, :rank], l[:, rank:]
        r_re, r_im = r[:, :rank], r[:, rank:]
        t_re, t_im = t[:, :rank], t[:, rank:]
        q_o = jnp.concatenate([l_re * r_re - l_im * r_im,
                               l_im * r_re + l_re * r_im], axis=1)
        q_s = jnp.concatenate([t_re * r_re + t_im * r_im,
                               t_im * r_re - t_re * r_im], axis=1)
        q = jnp.concatenate([q_o, q_s], axis=0)            # [2B, 2*rank]
        # single K=2*rank MXU contraction; dot_general contracts against dim 1
        # of the entity tile directly -- no transposed copy of E in VMEM.
        o_ref[...] = lax.dot_general(
            q, e_ref[...],
            dimension_numbers=(((1,), (1,)), ((), ())),
            preferred_element_type=jnp.float32,
        ).astype(o_ref.dtype)

    return kernel


def _make_single_kernel(rank: int, s1: float, s2: float):
    """Single-direction scoring (score_o: s1=-1,s2=+1 ; score_s: s1=+1,s2=-1)."""
    def kernel(a_ref, r_ref, e_ref, o_ref):
        a = a_ref[...]
        r = r_ref[...]
        a_re, a_im = a[:, :rank], a[:, rank:]
        r_re, r_im = r[:, :rank], r[:, rank:]
        q = jnp.concatenate([a_re * r_re + s1 * (a_im * r_im),
                             a_im * r_re + s2 * (a_re * r_im)], axis=1)
        o_ref[...] = lax.dot_general(
            q, e_ref[...],
            dimension_numbers=(((1,), (1,)), ((), ())),
            preferred_element_type=jnp.float32,
        ).astype(o_ref.dtype)

    return kernel


def _launch(kernel, small_inputs, ent_emb, n_out_rows, tile_n):
    """Launch a scoring kernel streaming the entity table once.

    small_inputs: tuple of [B, 2*rank] per-query embeddings (resident block)
    ent_emb:      [N, 2*rank] full entity table (streamed in tile_n tiles)
    returns:      [n_out_rows, N] scores (padding stripped)
    """
    N, two_rank = ent_emb.shape
    tn = _choose_tile(N, tile_n)
    n_pad = _round_up(N, tn)
    if n_pad != N:
        # padded rows are zero -> their (discarded) scores are zero
        ent_emb = jnp.pad(ent_emb, ((0, n_pad - N), (0, 0)))

    B = small_inputs[0].shape[0]
    small_spec = pl.BlockSpec((B, two_rank), lambda j: (0, 0))
    ent_spec = pl.BlockSpec((tn, two_rank), lambda j: (j, 0))

    scores = pl.pallas_call(
        kernel,
        out_shape=jax.ShapeDtypeStruct((n_out_rows, n_pad), jnp.float32),
        grid_spec=pltpu.PrefetchScalarGridSpec(
            num_scalar_prefetch=0,
            grid=(n_pad // tn,),
            in_specs=[small_spec] * len(small_inputs) + [ent_spec],
            out_specs=pl.BlockSpec((n_out_rows, tn), lambda j: (0, j)),
        ),
        # entity axis writes disjoint output blocks -> parallel (v7x: 2 TCs)
        compiler_params=pltpu.CompilerParams(
            dimension_semantics=("parallel",)),
    )(*small_inputs, ent_emb)
    return scores[:, :N]


# ----------------------------------------------------------------------------
# CQD module (parameters + score_candidates / loss, Pallas-backed hot path)
# ----------------------------------------------------------------------------
class CQDPallas:
    def __init__(self, nentity, nrelation, rank, init_size=1e-3,
                 reg_weight=0.01, tile_n=1024, key=None):
        self.rank = rank
        self.nentity = nentity
        self.nrelation = nrelation
        self.init_size = init_size
        self.reg_weight = reg_weight
        self.tile_n = tile_n
        key = jax.random.PRNGKey(0) if key is None else key
        k0, k1 = jax.random.split(key)
        # nn.Embedding default init ~ N(0,1), then scaled by init_size
        self.ent_emb = (jax.random.normal(k0, (nentity, 2 * rank), jnp.float32)
                        * init_size)
        self.rel_emb = (jax.random.normal(k1, (nrelation, 2 * rank), jnp.float32)
                        * init_size)
        # TODO(synk): for v5e (low HBM BW) the entity table can optionally be
        # streamed in bfloat16 with f32 MXU accumulation; kept f32 here to
        # preserve exact reference numerics.

    # --- embedding splits / regularizer (glue) ---------------------------
    def _split(self, emb):
        return emb[..., :self.rank], emb[..., self.rank:]

    def _factors(self, lhs_emb, rel_emb, rhs_emb):
        facs = []
        for emb in (lhs_emb, rel_emb, rhs_emb):
            re, im = self._split(emb)
            facs.append(jnp.sqrt(re ** 2 + im ** 2))
        return facs

    def _n3(self, factors):
        norm = 0.0
        for f in factors:
            norm = norm + self.reg_weight * jnp.sum(jnp.abs(f) ** 3)
        return norm / factors[0].shape[0]

    # --- scoring (Pallas hot path) ---------------------------------------
    def score_o(self, lhs_emb, rel_emb, to_score):
        kernel = _make_single_kernel(self.rank, -1.0, 1.0)
        return _launch(kernel, (lhs_emb, rel_emb), to_score,
                       lhs_emb.shape[0], self.tile_n)

    def score_s(self, to_score, rel_emb, rhs_emb):
        kernel = _make_single_kernel(self.rank, 1.0, -1.0)
        return _launch(kernel, (rhs_emb, rel_emb), to_score,
                       rhs_emb.shape[0], self.tile_n)

    def score_both(self, lhs_emb, rel_emb, rhs_emb, to_score):
        """Fused score_o + score_s: the entity table is streamed ONCE."""
        B = lhs_emb.shape[0]
        kernel = _make_pair_kernel(self.rank)
        scores = _launch(kernel, (lhs_emb, rel_emb, rhs_emb), to_score,
                         2 * B, self.tile_n)
        return scores[:B], scores[B:]

    def score_candidates(self, triples):
        lhs_emb = jnp.take(self.ent_emb, triples[:, 0], axis=0)
        rel_emb = jnp.take(self.rel_emb, triples[:, 1], axis=0)
        rhs_emb = jnp.take(self.ent_emb, triples[:, 2], axis=0)
        scores_o, scores_s = self.score_both(lhs_emb, rel_emb, rhs_emb,
                                             self.ent_emb)
        factors = self._factors(lhs_emb, rel_emb, rhs_emb)
        return (scores_o, scores_s), factors

    def loss(self, triples):
        (scores_o, scores_s), factors = self.score_candidates(triples)

        def xent(logits, labels):
            logz = jax.nn.logsumexp(logits, axis=-1)
            picked = jnp.take_along_axis(logits, labels[:, None], axis=-1)[:, 0]
            return jnp.mean(logz - picked)

        l_fit = xent(scores_o, triples[:, 2]) + xent(scores_s, triples[:, 0])
        return l_fit + self._n3(factors)

    # TODO(synk): the 'beam'/'d2'/'co' branches of CQD.forward depend on external
    # helpers (query_to_atoms, top_k_selection, d2.*) and an inner Adam loop not
    # provided; they all call back into score_o, which is Pallas-backed above.
    # TODO(synk): for training batches B >> 8, add a second parallel grid axis
    # over B with 128-row LHS tiles to fill the MXU M dimension.


# ----------------------------------------------------------------------------
# Pure-JAX reference (mirrors the PyTorch math) for verification
# ----------------------------------------------------------------------------
def ref_score_o(lhs_emb, rel_emb, rhs_emb, rank):
    lre, lim = lhs_emb[:, :rank], lhs_emb[:, rank:]
    rre, rim = rel_emb[:, :rank], rel_emb[:, rank:]
    ere, eim = rhs_emb[:, :rank], rhs_emb[:, rank:]
    return ((lre * rre - lim * rim) @ ere.T
            + (lim * rre + lre * rim) @ eim.T)


def ref_score_s(lhs_emb, rel_emb, rhs_emb, rank):
    lre, lim = lhs_emb[:, :rank], lhs_emb[:, rank:]
    rre, rim = rel_emb[:, :rank], rel_emb[:, rank:]
    tre, tim = rhs_emb[:, :rank], rhs_emb[:, rank:]
    return ((tre * rre + tim * rim) @ lre.T
            + (tim * rre - tre * rim) @ lim.T)


if __name__ == "__main__":
    # nentity deliberately NOT a multiple of the tile to exercise the
    # pad-and-slice tail path; tile_n=1024 -> 2-step grid over 2048 padded rows.
    nentity, nrelation, rank, batch = 2000, 8, 64, 8

    model = CQDPallas(nentity, nrelation, rank, tile_n=1024,
                      key=jax.random.PRNGKey(0))

    key = jax.random.PRNGKey(0)
    kh, kr, kt = jax.random.split(key, 3)
    triples = jnp.stack([
        jax.random.randint(kh, (batch,), 0, nentity),
        jax.random.randint(kr, (batch,), 0, nrelation),
        jax.random.randint(kt, (batch,), 0, nentity),
    ], axis=1).astype(jnp.int32)

    (scores_o, scores_s), factors = model.score_candidates(triples)
    loss = model.loss(triples)
    jax.block_until_ready((scores_o, scores_s, loss))

    # verify against pure-JAX reference of the PyTorch math
    lhs_emb = jnp.take(model.ent_emb, triples[:, 0], axis=0)
    rel_emb = jnp.take(model.rel_emb, triples[:, 1], axis=0)
    rhs_emb = jnp.take(model.ent_emb, triples[:, 2], axis=0)
    ref_o = ref_score_o(lhs_emb, rel_emb, model.ent_emb, rank)
    ref_s = ref_score_s(model.ent_emb, rel_emb, rhs_emb, rank)

    assert scores_o.shape == (batch, nentity)
    assert scores_s.shape == (batch, nentity)
    assert jnp.allclose(scores_o, ref_o, atol=1e-5, rtol=1e-5)
    assert jnp.allclose(scores_s, ref_s, atol=1e-5, rtol=1e-5)

    # also exercise the standalone (single-direction) kernels used by the
    # other CQD.forward branches
    so = model.score_o(lhs_emb, rel_emb, model.ent_emb)
    ss = model.score_s(model.ent_emb, rel_emb, rhs_emb)
    jax.block_until_ready((so, ss))
    assert jnp.allclose(so, ref_o, atol=1e-5, rtol=1e-5)
    assert jnp.allclose(ss, ref_s, atol=1e-5, rtol=1e-5)
    assert jnp.isfinite(loss)

    print("KERNEL_OK")
</pallas_src>

<mosaic_0001>
module attributes {stable_mosaic.version = 11 : i64} {
  func.func @kernel(%arg0: i32, %arg1: memref<8x128xf32, #tpu.memory_space<vmem>>, %arg2: memref<8x128xf32, #tpu.memory_space<vmem>>, %arg3: memref<8x128xf32, #tpu.memory_space<vmem>>, %arg4: memref<1024x128xf32, #tpu.memory_space<vmem>>, %arg5: memref<16x1024xf32, #tpu.memory_space<vmem>>) attributes {dimension_semantics = [#tpu.dimension_semantics<parallel>], iteration_bounds = array<i64: 2>, scalar_prefetch = 0 : i64, scratch_operands = 0 : i64, tpu.core_type = #tpu.core_type<tc>, window_params = [{pipeline_mode = #tpu.pipeline_mode<synchronous>, transform_indices = @transform_0, window_bounds = array<i64: 8, 128>}, {pipeline_mode = #tpu.pipeline_mode<synchronous>, transform_indices = @transform_1, window_bounds = array<i64: 8, 128>}, {pipeline_mode = #tpu.pipeline_mode<synchronous>, transform_indices = @transform_2, window_bounds = array<i64: 8, 128>}, {transform_indices = @transform_3, window_bounds = array<i64: 1024, 128>}, {transform_indices = @transform_4, window_bounds = array<i64: 16, 1024>}]} {
    %c0 = arith.constant 0 : index
    %c0_0 = arith.constant 0 : index
    %0 = vector.load %arg1[%c0, %c0_0] : memref<8x128xf32, #tpu.memory_space<vmem>>, vector<8x128xf32>
    %c0_1 = arith.constant 0 : index
    %c0_2 = arith.constant 0 : index
    %1 = vector.load %arg2[%c0_1, %c0_2] : memref<8x128xf32, #tpu.memory_space<vmem>>, vector<8x128xf32>
    %c0_3 = arith.constant 0 : index
    %c0_4 = arith.constant 0 : index
    %2 = vector.load %arg3[%c0_3, %c0_4] : memref<8x128xf32, #tpu.memory_space<vmem>>, vector<8x128xf32>
    %3 = vector.extract_strided_slice %0 {offsets = [0, 0], sizes = [8, 64], strides = [1, 1]} : vector<8x128xf32> to vector<8x64xf32>
    %4 = vector.extract_strided_slice %0 {offsets = [0, 64], sizes = [8, 64], strides = [1, 1]} : vector<8x128xf32> to vector<8x64xf32>
    %5 = vector.extract_strided_slice %1 {offsets = [0, 0], sizes = [8, 64], strides = [1, 1]} : vector<8x128xf32> to vector<8x64xf32>
    %6 = vector.extract_strided_slice %1 {offsets = [0, 64], sizes = [8, 64], strides = [1, 1]} : vector<8x128xf32> to vector<8x64xf32>
    %7 = vector.extract_strided_slice %2 {offsets = [0, 0], sizes = [8, 64], strides = [1, 1]} : vector<8x128xf32> to vector<8x64xf32>
    %8 = vector.extract_strided_slice %2 {offsets = [0, 64], sizes = [8, 64], strides = [1, 1]} : vector<8x128xf32> to vector<8x64xf32>
    %9 = arith.mulf %3, %5 : vector<8x64xf32>
    %10 = arith.mulf %4, %6 : vector<8x64xf32>
    %11 = arith.subf %9, %10 : vector<8x64xf32>
    %12 = arith.mulf %4, %5 : vector<8x64xf32>
    %13 = arith.mulf %3, %6 : vector<8x64xf32>
    %14 = arith.addf %12, %13 : vector<8x64xf32>
    %15 = tpu.concatenate %11, %14 in 1 : vector<8x64xf32>, vector<8x64xf32> -> vector<8x128xf32>
    %16 = arith.mulf %7, %5 : vector<8x64xf32>
    %17 = arith.mulf %8, %6 : vector<8x64xf32>
    %18 = arith.addf %16, %17 : vector<8x64xf32>
    %19 = arith.mulf %8, %5 : vector<8x64xf32>
    %20 = arith.mulf %7, %6 : vector<8x64xf32>
    %21 = arith.subf %19, %20 : vector<8x64xf32>
    %22 = tpu.concatenate %18, %21 in 1 : vector<8x64xf32>, vector<8x64xf32> -> vector<8x128xf32>
    %23 = tpu.concatenate %15, %22 in 0 : vector<8x128xf32>, vector<8x128xf32> -> vector<16x128xf32>
    %c0_5 = arith.constant 0 : index
    %c0_6 = arith.constant 0 : index
    %24 = vector.load %arg4[%c0_5, %c0_6] : memref<1024x128xf32, #tpu.memory_space<vmem>>, vector<1024x128xf32>
    %cst = arith.constant dense<0.000000e+00> : vector<16x1024xf32>
    %25 = tpu.matmul %23, %24, %cst {dimension_numbers = #tpu.dot_dimension_numbers<[1], [1], [0], [0], [0, 0, 1, 0], [], []>} : vector<16x128xf32>, vector<1024x128xf32>, vector<16x1024xf32> -> vector<16x1024xf32>
    %c0_7 = arith.constant 0 : index
    %c0_8 = arith.constant 0 : index
    %26 = vector.load %arg5[%c0_7, %c0_8] : memref<16x1024xf32, #tpu.memory_space<vmem>>, vector<16x1024xf32>
    tpu.vector_store %arg5[%c0_7, %c0_8], %25 {strides = array<i32>} : memref<16x1024xf32, #tpu.memory_space<vmem>>, vector<16x1024xf32>,
    return
  }
  func.func @transform_0(%arg0: i32) -> (i32, i32) {
    %c0_i32 = arith.constant 0 : i32
    %c0_i32_0 = arith.constant 0 : i32
    %c0_i32_1 = arith.constant 0 : i32
    return %c0_i32, %c0_i32_0 : i32, i32
  }
  func.func @transform_1(%arg0: i32) -> (i32, i32) {
    %c0_i32 = arith.constant 0 : i32
    %c0_i32_0 = arith.constant 0 : i32
    %c0_i32_1 = arith.constant 0 : i32
    return %c0_i32, %c0_i32_0 : i32, i32
  }
  func.func @transform_2(%arg0: i32) -> (i32, i32) {
    %c0_i32 = arith.constant 0 : i32
    %c0_i32_0 = arith.constant 0 : i32
    %c0_i32_1 = arith.constant 0 : i32
    return %c0_i32, %c0_i32_0 : i32, i32
  }
  func.func @transform_3(%arg0: i32) -> (i32, i32) {
    %c0_i32 = arith.constant 0 : i32
    %c0_i32_0 = arith.constant 0 : i32
    return %arg0, %c0_i32 : i32, i32
  }
  func.func @transform_4(%arg0: i32) -> (i32, i32) {
    %c0_i32 = arith.constant 0 : i32
    %c0_i32_0 = arith.constant 0 : i32
    return %c0_i32, %arg0 : i32, i32
  }
}

</mosaic_0001>

<bundles_post_ra>
// kernel: tpu_custom_call.1
= control target key start
LH: loop header
LB: loop body
LE: loop exit
PB: predicated region body
PF: predicated region fallthrough
CT: control target
= control target key end

     0   :  { %9 = vsyncpa [#allocation3], 0  ;;  %s1908_s0 = inlined_call_operand.hbm [shape: f32[8,128], index: 0, kind: input, shape index: {}]   ;;  %s1909_s1 = inlined_call_operand.hbm [shape: f32[8,128], index: 1, kind: input, shape index: {}]   ;;  %s1910_s2 = inlined_call_operand.hbm [shape: f32[8,128], index: 2, kind: input, shape index: {}]   ;;  %s1911_s3 = inlined_call_operand.hbm [shape: f32[2048,128], index: 3, kind: input, shape index: {}]   ;;  %s1912_s4 = inlined_call_operand.hbm [shape: f32[16,2048], index: 4, kind: output, shape index: {}]  }
   0x1   :  { %10 = vsyncpa [#allocation6], 0 }
   0x2   :  { %11 = vsyncpa [#allocation9], 0 }
   0x3   :  { %13 = vsyncpa [#allocation9 + $0x1], 0 }
   0x4   :  { %14 = vsyncpa [#allocation4], 0 }
   0x5   :  { %16 = vsyncpa [#allocation4 + $0x1], 0  ;;  %s1461_s15 = smov 0   ;;  %s1463_s16 = smov 0  }
   0x6   :  { %s1465_s17 = smov 0   ;;  %s1467_s18 = smov 0  }
   0x7 LB: > { %s1482_s19 = sadd.s32 4294967295, %s1424_s18   ;;  %s860_s20 = sadd.s32 4294967294, %s1424_s18   ;;  %s1424_s18 = sphi %s1467_s18, %s1935_s18   ;;  %s1420_s17 = sphi %s1465_s17, %s1934_s17   ;;  %s1416_s16 = sphi %s1463_s16, %s1933_s16   ;;  %s1412_s15 = sphi %s1461_s15, %s1932_s15  }
   0x8   : > { %p105_p0 = scmp.ne.s32.totalorder %s1416_s16, %s1412_s15  ;;  %p1913_p1 = scmp.eq.s32.totalorder %s1482_s19, 0 }
   0x9   : > { %p135_p3 = scmp.eq.s32.totalorder %s860_s20, 1  ;;  %p861_p5 = scmp.ge.s32.totalorder %s1424_s18, 1 }
   0xa   : > { %p1491_p4 = por %p1913_p1, %p105_p0  ;;  %p142_p7 = scmp.lt.s32.totalorder %s1424_s18, 3 }
   0xb   : > { %p1496_p6 = por %p135_p3, %p105_p0  ;;  %s1426_s24 = smov [#allocation5]  }
   0xc   : > { %s1916_s21 = scalar_select %p1491_p4, 1, 0 }
   0xd   : > { %s1917_s22 = scalar_select %p1496_p6, 1, 0 }
   0xe   : > { %p1501_p8 = pnand %p861_p5, %p142_p7  ;;  %s166_s25 = sshll.u32 %s1426_s24, 4  ;;  %s167_s25 = int_to_ptr.vmem [resolvable:$true] %s166_s25 }
   0xf   : > { %s1427_s26 = smov [#allocation2]   ;;  %s1428_s29 = smov [#allocation7]  }
  0x10   : > { %s1918_s23 = scalar_select %p1501_p8, 1, 0 }
  0x11   : > { %p1170_p10 = pneg %p1501_p8  ;;  %s155_s27 = sshll.u32 %s1427_s26, 4  ;;  %s1514_s27 = int_to_ptr.vmem [resolvable:$true] %s155_s27 }
  0x12   : > { %s177_s30 = sshll.u32 %s1428_s29, 4  ;;  %s1236_s7 = scalar_lea.hbm %s1909_s1, 128  ;;  %s1516_s30 = int_to_ptr.vmem [resolvable:$true] %s177_s30 }
  0x13   : > { %p1510_p11 = pnand %p1170_p10, %p1913_p1  ;;  %p1237_p12 = scmp.ne.s32.totalorder %s1909_s1, %s1236_s7 }
  0x14   : > { %p1243_p5 = scmp.lt.u32.totalorder %s1236_s7, %s1909_s1 }
  0x15   : > { %p1526_p13 = pneg %p1510_p11 }
  0x17   : > { %p1239_p0 = pnand %p1526_p13, %p1237_p12 }
  0x19   : > { %p1240_p3 = pneg %p1239_p0 }
  0x1b   : > { %p1245_p7 = pnand %p1243_p5, %p1240_p3 }
  0x1d   : > { %1248 = shalt.err (!%p1245_p7)
}
  0x1e   : > { %s1249_s13 = scalar_lea.vmem %s167_s25, 128  ;;  %p1257_p2 = scmp.lt.s32.totalorder %s167_s25, %s167_s25 }
  0x1f   : > { %p1250_p10 = scmp.ne.s32.totalorder %s167_s25, %s1249_s13  ;;  %p1258_p6 = scmp.lt.s32.totalorder %s1249_s13, %s1249_s13 }
  0x21   : > { %p1252_p9 = pnand %p1250_p10, %p1526_p13  ;;  %p1259_p4 = por %p1258_p6, %p1257_p2 }
  0x23   : > { %p1253_p1 = pneg %p1252_p9 }
  0x25   : > { %p1260_p8 = pnand %p1259_p4, %p1253_p1 }
  0x27   : > { %1263 = shalt.err (!%p1260_p8)
}
  0x28   : > { %1176 = dma.hbm_to_vmem [thread:$0]  (!%p1510_p11), %s1909_s1, 128, %s167_s25, [#allocation6]  }
  0x29   : > { %s1264_s29 = scalar_lea.hbm %s1908_s0, 128 }
  0x2a   : > { %p1265_p9 = scmp.ne.s32.totalorder %s1908_s0, %s1264_s29  ;;  %p1271_p1 = scmp.lt.u32.totalorder %s1264_s29, %s1908_s0 }
  0x2c   : > { %p1267_p12 = pnand %p1265_p9, %p1526_p13 }
  0x2e   : > { %p1268_p2 = pneg %p1267_p12 }
  0x30   : > { %p1273_p4 = pnand %p1271_p1, %p1268_p2 }
  0x32   : > { %1276 = shalt.err (!%p1273_p4)
}
  0x33   : > { %s1277_s25 = scalar_lea.vmem %s1514_s27, 128  ;;  %p1285_p3 = scmp.lt.s32.totalorder %s1514_s27, %s1514_s27 }
  0x34   : > { %p1278_p6 = scmp.ne.s32.totalorder %s1514_s27, %s1277_s25  ;;  %p1286_p5 = scmp.lt.s32.totalorder %s1277_s25, %s1277_s25 }
  0x36   : > { %p1280_p8 = pnand %p1278_p6, %p1526_p13  ;;  %p1287_p7 = por %p1286_p5, %p1285_p3 }
  0x38   : > { %p1281_p0 = pneg %p1280_p8 }
  0x3a   : > { %p1288_p10 = pnand %p1287_p7, %p1281_p0 }
  0x3c   : > { %1291 = shalt.err (!%p1288_p10)
}
  0x3d   : > { %1173 = dma.hbm_to_vmem [thread:$0]  (!%p1510_p11), %s1908_s0, 128, %s1514_s27, [#allocation3]  }
  0x3e   : > { %s1292_s14 = scalar_lea.hbm %s1910_s2, 128 }
  0x3f   : > { %p1293_p9 = scmp.ne.s32.totalorder %s1910_s2, %s1292_s14  ;;  %p1299_p1 = scmp.lt.u32.totalorder %s1292_s14, %s1910_s2 }
  0x41   : > { %p1295_p12 = pnand %p1293_p9, %p1526_p13 }
  0x43   : > { %p1296_p2 = pneg %p1295_p12 }
  0x45   : > { %p1301_p4 = pnand %p1299_p1, %p1296_p2 }
  0x47   : > { %1304 = shalt.err (!%p1301_p4)
}
  0x48   : > { %s1305_s27 = scalar_lea.vmem %s1516_s30, 128  ;;  %p1313_p3 = scmp.lt.s32.totalorder %s1516_s30, %s1516_s30 }
  0x49   : > { %p1306_p6 = scmp.ne.s32.totalorder %s1516_s30, %s1305_s27  ;;  %p1314_p5 = scmp.lt.s32.totalorder %s1305_s27, %s1305_s27 }
  0x4b   : > { %p1308_p8 = pnand %p1306_p6, %p1526_p13  ;;  %p1315_p7 = por %p1314_p5, %p1313_p3 }
  0x4d   : > { %p1309_p0 = pneg %p1308_p8 }
  0x4f   : > { %p1316_p10 = pnand %p1315_p7, %p1309_p0 }
  0x51   : > { %1319 = shalt.err (!%p1316_p10)
}
  0x52   : > { %1179 = dma.hbm_to_vmem [thread:$0]  (!%p1510_p11), %s1910_s2, 128, %s1516_s30, [#allocation6]  }
  0x53   : > { %s1589_s10 = sadd.s32 1, %s1424_s18   ;;  %s92_s7 = sadd.s32 1, %s1420_s17 }
  0x54   : > { %s89_s28 = ssub.s32 %s1424_s18, %s1589_s10  ;;  %p99_p9 = scmp.ne.s32.totalorder %s1420_s17, %s1416_s16 }
  0x55   : > { %p90_p13 = scmp.eq.s32.totalorder %s89_s28, 0  ;;  %p100_p12 = scmp.eq.s32.totalorder %s1424_s18, 0 }
  0x56   : > { %p1191_p2 = scmp.lt.s32.totalorder %s1424_s18, 2  ;;  %p1921_p4 = scmp.eq.s32.totalorder %s1482_s19, 1 }
  0x57   : > { %s1599_s8 = scalar_select %p90_p13, %s1420_s17, %s92_s7  }
  0x58   : > { %p101_p1 = por %p100_p12, %p99_p9  ;;  %p1603_p6 = por %p1921_p4, %p99_p9 }
  0x59   : > { %s188_s9 = sand.u32 1, %s1420_s17   ;;  %s880_s11 = sshll.u32 %s1424_s18, 14 }
  0x5a   : > { %s866_s30 = sshll.u32 %s188_s9, 10  ;;  %s1612_s14 = scalar_lea.hbm %s1911_s3, %s880_s11 }
  0x5b   : > { %s192_s20 = scalar_lea.vmem [#allocation8], %s866_s30  ;;  %p1614_p11 = pnand %p1191_p2, %p101_p1 }
  0x5c   : > { %s199_s24 = sshll.u32 %s192_s20, 4  ;;  %s1620_s29 = scalar_lea.sflag [#allocation9], %s188_s9  ;;  %s1618_s24 = int_to_ptr.vmem [resolvable:$true] %s199_s24 }
  0x5d   : > { %s1320_s27 = scalar_lea.hbm %s1612_s14, 16384  ;;  %p1322_p0 = pneg %p1614_p11 }
  0x5e   : > { %p1321_p8 = scmp.ne.s32.totalorder %s1612_s14, %s1320_s27  ;;  %s1325_s28 = scalar_lea.hbm %s1911_s3, 32768 }
  0x5f   : > { %p1326_p7 = scmp.lt.u32.totalorder %s1612_s14, %s1911_s3  ;;  %p1327_p10 = scmp.lt.u32.totalorder %s1325_s28, %s1320_s27 }
  0x60   : > { %p1323_p3 = pnand %p1322_p0, %p1321_p8  ;;  %p1329_p9 = scmp.lt.u32.totalorder %s1320_s27, %s1612_s14 }
  0x61   : > { %p1328_p13 = por %p1327_p10, %p1326_p7 }
  0x62   : > { %p1324_p5 = pneg %p1323_p3 }
  0x63   : > { %p1330_p12 = por %p1329_p9, %p1328_p13 }
  0x65   : > { %p1331_p2 = pnand %p1330_p12, %p1324_p5 }
  0x67   : > { %1334 = shalt.err (!%p1331_p2)
}
  0x68   : > { %s1335_s9 = scalar_lea.vmem %s1618_s24, 16384  ;;  %s1429_s30 = smov [#allocation8]  }
  0x69   : > { %p1336_p1 = scmp.ne.s32.totalorder %s1618_s24, %s1335_s9  ;;  %s1340_s12 = sshll.u32 %s1429_s30, 4  ;;  %s1341_s12 = int_to_ptr.vmem [resolvable:$false] %s1340_s12 }
  0x6a   : > { %s1342_s13 = scalar_lea.vmem %s1341_s12, 32768  ;;  %p1343_p3 = scmp.lt.s32.totalorder %s1618_s24, %s1341_s12 }
  0x6b   : > { %p1338_p4 = pnand %p1336_p1, %p1322_p0  ;;  %p1344_p7 = scmp.lt.s32.totalorder %s1342_s13, %s1335_s9 }
  0x6d   : > { %p1339_p8 = pneg %p1338_p4  ;;  %p1345_p10 = por %p1344_p7, %p1343_p3 }
  0x6f   : > { %p1346_p13 = pnand %p1345_p10, %p1339_p8 }
  0x71   : > { %1349 = shalt.err (!%p1346_p13)
}
  0x72   : > { %s1430_s20 = smov 128   ;;  %s1431_s27 = smov 8  }
  0x73   : > { %1183 = dma.hbm_to_vmem [thread:$0]  (!%p1614_p11), %s1612_s14, 16384, %s1618_s24, %s1620_s29, %s1430_s20, %s1430_s20, %s1431_s27  }
  0x74   : > { %p1924_p0 = scmp.ne.s32.totalorder %s1918_s23, 0 }
  0x75   : > { %p1925_p5 = scmp.eq.s32.totalorder (!%p1924_p0), %s1482_s19, 0 }
  0x76   : > { %211 = sbr.rel (%p1924_p0) target bundleno = 666 (0x29a), region = 36 }
  0x7d   : > { %1395 = dma.done.wait (%p1925_p5), [#allocation3], 128   ;;  %p1926_p9 = pmov %p1925_p5 }
  0x7e   : > { %p1927_p12 = pmov %p1925_p5 }
  0x7f   : > { %1397 = vsyncadd (%p1926_p9), [#allocation3], 4294967168 }
  0x80   : > { %1399 = dma.done.wait (%p1927_p12), [#allocation6], 256   ;;  %p1928_p2 = pmov %p1925_p5 }
  0x81   : > { %s1659_s5 = sand.u32 1, %s1416_s16   ;;  %p1929_p11 = scmp.ne.s32.totalorder %s1916_s21, 0 }
  0x82   : > { %1401 = vsyncadd (%p1928_p2), [#allocation6], 4294967040  ;;  %s873_s23 = sshll.u32 %s1659_s5, 10  ;;  %s226_s14 = scalar_lea.sflag [#allocation9], %s1659_s5 }
  0x83   : > { %s1663_s24 = scalar_lea.vmem [#allocation8], %s873_s23 }
  0x84   : > { %1403 = dma.done.wait (%p1929_p11), %s226_s14, 16384  }
  0x85   : > { %1405 = vsyncadd (%p1929_p11), %s226_s14, 4294950912  ;;  %v1669_v0 = vld [vmem:[#allocation5] sm:$0xff]  ;;  %v1671_v1 = vld [vmem:[#allocation2] sm:$0xff]  ;;  %s1432_s26 = smov 64   ;;  %vm275_vm0 = vcmask 523264   ;;  %s874_s21 = sshll.u32 %s1659_s5, 7 }
  0x86   : > { %266 = vrot.lane.b32.xlu0 %v1669_v0, %s1432_s26  ;;  %v1677_v2 = vmul.f32 %v1669_v0, %v1671_v1  ;;  %v306_v3 = vld [vmem:[%s1663_s24 + $0x80] sm:$0xff]  ;;  %v307_v4 = vld [vmem:[%s1663_s24 + $0x88] sm:$0xff]  ;;  %v308_v14 = vld [vmem:[%s1663_s24 + $0x90] sm:$0xff]  ;;  %s1838_s29 = scalar_lea.vmem [#allocation10], %s874_s21  ;;  %s881_s6 = sshll.u32 %s1482_s19, 10 }
  0x87   : > { %v338_v5 = vld [vmem:[%s1663_s24 + $0x180] sm:$0xff]  ;;  %v1026_v6 = vpack.c.bf16 %v307_v4, %v306_v3  ;;  %v339_v7 = vld [vmem:[%s1663_s24 + $0x188] sm:$0xff]  ;;  %v309_v16 = vld [vmem:[%s1663_s24 + $0x98] sm:$0xff]  ;;  %s756_s28 = sshll.u32 %s1838_s29, 4  ;;  %s1857_s9 = scalar_lea.hbm %s1912_s4, %s881_s6  ;;  %s1859_s28 = int_to_ptr.vmem [resolvable:$true] %s756_s28 }
  0x88   : > { %v290_v8 = vld [vmem:[%s1663_s24] sm:$0xff]  ;;  %v291_v9 = vld [vmem:[%s1663_s24 + $0x8] sm:$0xff]  ;;  %v1058_v10 = vpack.c.bf16 %v339_v7, %v338_v5  ;;  %v340_v17 = vld [vmem:[%s1663_s24 + $0x190] sm:$0xff]  ;;  %v1030_v19 = vpack.c.bf16 %v309_v16, %v308_v14  ;;  %s743_s19 = scalar_lea.sflag [#allocation4], %s1659_s5  ;;  %s1350_s30 = scalar_lea.vmem %s1859_s28, 2048 }
  0x89   : > { %v1028_v11 = vpack.c.bf16 %v291_v9, %v290_v8  ;;  %v322_v12 = vld [vmem:[%s1663_s24 + $0x100] sm:$0xff]  ;;  %v323_v13 = vld [vmem:[%s1663_s24 + $0x108] sm:$0xff]  ;;  %1027 = vmatprep.subr.bf16.mxu0 %v1026_v6  ;;  %v341_v18 = vld [vmem:[%s1663_s24 + $0x198] sm:$0xff]  ;;  %p1351_p1 = scmp.ne.s32.totalorder %s1859_s28, %s1350_s30  ;;  %s1433_s12 = smov [#allocation10]  }
  0x8a   : > { %v1060_v15 = vpack.c.bf16 %v323_v13, %v322_v12  ;;  %261 = vrot.lane.b32.xlu0 %v1677_v2, %s1432_s26  ;;  %1059 = vmatprep.subr.bf16.mxu1 %v1058_v10  ;;  %v1062_v20 = vpack.c.bf16 %v341_v18, %v340_v17  ;;  %v292_v21 = vld [vmem:[%s1663_s24 + $0x10] sm:$0xff]  ;;  %v293_v22 = vld [vmem:[%s1663_s24 + $0x18] sm:$0xff]  ;;  %v310_v25 = vld [vmem:[%s1663_s24 + $0xa0] sm:$0xff]  ;;  %s1354_s13 = sshll.u32 %s1433_s12, 4  ;;  %s1355_s13 = int_to_ptr.vmem [resolvable:$false] %s1354_s13 }
  0x8b   : > { %1029 = vmatpush3.bf16.xpose.msra.mxu0 %v1028_v11  ;;  %v324_v23 = vld [vmem:[%s1663_s24 + $0x110] sm:$0xff]  ;;  %v325_v24 = vld [vmem:[%s1663_s24 + $0x118] sm:$0xff]  ;;  %v311_v26 = vld [vmem:[%s1663_s24 + $0xa8] sm:$0xff]  ;;  %v1032_v29 = vpack.c.bf16 %v293_v22, %v292_v21  ;;  %p1352_p4 = pnand %p1351_p1, %p1603_p6  ;;  %s1356_s20 = scalar_lea.vmem %s1355_s13, 4096 }
  0x8c   : > { %1061 = vmatpush3.bf16.xpose.msra.mxu1 %v1060_v15  ;;  %1031 = vmatprep.subr.bf16.mxu0 %v1030_v19  ;;  %v342_v27 = vld [vmem:[%s1663_s24 + $0x1a0] sm:$0xff]  ;;  %v343_v28 = vld [vmem:[%s1663_s24 + $0x1a8] sm:$0xff]  ;;  %v1064_v30 = vpack.c.bf16 %v325_v24, %v324_v23  ;;  %v1034_v31 = vpack.c.bf16 %v311_v26, %v310_v25  ;;  %v312_v37 = vld [vmem:[%s1663_s24 + $0xb0] sm:$0xff]  ;;  %p1357_p3 = scmp.lt.s32.totalorder %s1859_s28, %s1355_s13  ;;  %p1358_p7 = scmp.lt.s32.totalorder %s1356_s20, %s1350_s30 }
  0x8d   : > { %1063 = vmatprep.subr.bf16.mxu1 %v1062_v20  ;;  %v1066_v32 = vpack.c.bf16 %v343_v28, %v342_v27  ;;  %v294_v33 = vld [vmem:[%s1663_s24 + $0x20] sm:$0xff]  ;;  %v295_v34 = vld [vmem:[%s1663_s24 + $0x28] sm:$0xff]  ;;  %v313_v38 = vld [vmem:[%s1663_s24 + $0xb8] sm:$0xff]  ;;  %p1353_p8 = pneg %p1352_p4 }
  0x8e   : > { %v326_v35 = vld [vmem:[%s1663_s24 + $0x120] sm:$0xff]  ;;  %v327_v36 = vld [vmem:[%s1663_s24 + $0x128] sm:$0xff]  ;;  %v344_v39 = vld [vmem:[%s1663_s24 + $0x1b0] sm:$0xff]  ;;  %v1036_v41 = vpack.c.bf16 %v295_v34, %v294_v33  ;;  %v1038_v43 = vpack.c.bf16 %v313_v38, %v312_v37  ;;  %p1359_p10 = por %p1358_p7, %p1357_p3 }
  0x8f   : > { %v345_v40 = vld [vmem:[%s1663_s24 + $0x1b8] sm:$0xff]  ;;  %v1068_v42 = vpack.c.bf16 %v327_v36, %v326_v35  ;;  %v296_v45 = vld [vmem:[%s1663_s24 + $0x30] sm:$0xff]  ;;  %v314_v49 = vld [vmem:[%s1663_s24 + $0xc0] sm:$0xff] }
  0x90   : > { %v1070_v44 = vpack.c.bf16 %v345_v40, %v344_v39  ;;  %v297_v46 = vld [vmem:[%s1663_s24 + $0x38] sm:$0xff]  ;;  %v328_v47 = vld [vmem:[%s1663_s24 + $0x130] sm:$0xff]  ;;  %v315_v50 = vld [vmem:[%s1663_s24 + $0xc8] sm:$0xff]  ;;  %p1360_p13 = pnand %p1359_p10, %p1353_p8 }
  0x91   : > { %v329_v48 = vld [vmem:[%s1663_s24 + $0x138] sm:$0xff]  ;;  %v346_v51 = vld [vmem:[%s1663_s24 + $0x1c0] sm:$0xff]  ;;  %v347_v52 = vld [vmem:[%s1663_s24 + $0x1c8] sm:$0xff]  ;;  %v1040_v53 = vpack.c.bf16 %v297_v46, %v296_v45  ;;  %v1042_v55 = vpack.c.bf16 %v315_v50, %v314_v49 }
  0x92   : > { %v1072_v54 = vpack.c.bf16 %v329_v48, %v328_v47  ;;  %v1074_v56 = vpack.c.bf16 %v347_v52, %v346_v51  ;;  %v298_v57 = vld [vmem:[%s1663_s24 + $0x40] sm:$0xff]  ;;  %v299_v58 = vld [vmem:[%s1663_s24 + $0x48] sm:$0xff]  ;;  %v316_v61 = vld [vmem:[%s1663_s24 + $0xd0] sm:$0xff] }
  0x93   : > { %1033 = vmatpush3.bf16.xpose.msra.mxu0 %v1032_v29  ;;  %v330_v59 = vld [vmem:[%s1663_s24 + $0x140] sm:$0xff]  ;;  %v331_v60 = vld [vmem:[%s1663_s24 + $0x148] sm:$0xff]  ;;  %v317_v62 = vld [vmem:[%s1663_s24 + $0xd8] sm:$0xff]  ;;  %v1044_v4 = vpack.c.bf16 %v299_v58, %v298_v57 }
  0x94   : > { %1065 = vmatpush3.bf16.xpose.msra.mxu1 %v1064_v30  ;;  %1035 = vmatprep.subr.bf16.mxu0 %v1034_v31  ;;  %v348_v63 = vld [vmem:[%s1663_s24 + $0x1d0] sm:$0xff]  ;;  %v349_v3 = vld [vmem:[%s1663_s24 + $0x1d8] sm:$0xff]  ;;  %v1076_v5 = vpack.c.bf16 %v331_v60, %v330_v59  ;;  %v1046_v6 = vpack.c.bf16 %v317_v62, %v316_v61  ;;  %v318_v12 = vld [vmem:[%s1663_s24 + $0xe0] sm:$0xff] }
  0x95   : > { %1067 = vmatprep.subr.bf16.mxu1 %v1066_v32  ;;  %v1078_v7 = vpack.c.bf16 %v349_v3, %v348_v63  ;;  %v300_v8 = vld [vmem:[%s1663_s24 + $0x50] sm:$0xff]  ;;  %v301_v9 = vld [vmem:[%s1663_s24 + $0x58] sm:$0xff]  ;;  %v319_v13 = vld [vmem:[%s1663_s24 + $0xe8] sm:$0xff] }
  0x96   : > { %v332_v10 = vld [vmem:[%s1663_s24 + $0x150] sm:$0xff]  ;;  %v333_v11 = vld [vmem:[%s1663_s24 + $0x158] sm:$0xff]  ;;  %v350_v14 = vld [vmem:[%s1663_s24 + $0x1e0] sm:$0xff]  ;;  %v1048_v16 = vpack.c.bf16 %v301_v9, %v300_v8  ;;  %v1050_v18 = vpack.c.bf16 %v319_v13, %v318_v12 }
  0x97   : > { %v351_v15 = vld [vmem:[%s1663_s24 + $0x1e8] sm:$0xff]  ;;  %v1080_v17 = vpack.c.bf16 %v333_v11, %v332_v10  ;;  %v302_v20 = vld [vmem:[%s1663_s24 + $0x60] sm:$0xff]  ;;  %v320_v24 = vld [vmem:[%s1663_s24 + $0xf0] sm:$0xff] }
  0x98   : > { %v1082_v19 = vpack.c.bf16 %v351_v15, %v350_v14  ;;  %v303_v21 = vld [vmem:[%s1663_s24 + $0x68] sm:$0xff]  ;;  %v334_v22 = vld [vmem:[%s1663_s24 + $0x160] sm:$0xff]  ;;  %v321_v25 = vld [vmem:[%s1663_s24 + $0xf8] sm:$0xff] }
  0x99   : > { %v335_v23 = vld [vmem:[%s1663_s24 + $0x168] sm:$0xff]  ;;  %v352_v26 = vld [vmem:[%s1663_s24 + $0x1f0] sm:$0xff]  ;;  %v353_v27 = vld [vmem:[%s1663_s24 + $0x1f8] sm:$0xff]  ;;  %v1052_v28 = vpack.c.bf16 %v303_v21, %v302_v20  ;;  %v1054_v30 = vpack.c.bf16 %v321_v25, %v320_v24 }
  0x9a   : > { %v1084_v29 = vpack.c.bf16 %v335_v23, %v334_v22  ;;  %v1086_v31 = vpack.c.bf16 %v353_v27, %v352_v26  ;;  %v304_v32 = vld [vmem:[%s1663_s24 + $0x70] sm:$0xff]  ;;  %v305_v33 = vld [vmem:[%s1663_s24 + $0x78] sm:$0xff]  ;;  %v370_v38 = vld [vmem:[%s1663_s24 + $0x280] sm:$0xff] }
  0x9b   : > { %1037 = vmatpush3.bf16.xpose.msra.mxu0 %v1036_v41  ;;  %v336_v34 = vld [vmem:[%s1663_s24 + $0x170] sm:$0xff]  ;;  %v337_v35 = vld [vmem:[%s1663_s24 + $0x178] sm:$0xff]  ;;  %v1056_v36 = vpack.c.bf16 %v305_v33, %v304_v32  ;;  %v371_v39 = vld [vmem:[%s1663_s24 + $0x288] sm:$0xff] }
  0x9c   : > { %1069 = vmatpush3.bf16.xpose.msra.mxu1 %v1068_v42  ;;  %1039 = vmatprep.subr.bf16.mxu0 %v1038_v43  ;;  %v1088_v37 = vpack.c.bf16 %v337_v35, %v336_v34  ;;  %v402_v40 = vld [vmem:[%s1663_s24 + $0x380] sm:$0xff]  ;;  %v1090_v41 = vpack.c.bf16 %v371_v39, %v370_v38  ;;  %v403_v42 = vld [vmem:[%s1663_s24 + $0x388] sm:$0xff]  ;;  %v404_v57 = vld [vmem:[%s1663_s24 + $0x390] sm:$0xff] }
  0x9d   : > { %1071 = vmatprep.subr.bf16.mxu1 %v1070_v44  ;;  %v1122_v43 = vpack.c.bf16 %v403_v42, %v402_v40  ;;  %v258_v44 = vld [vmem:[#allocation7] sm:$0xff]  ;;  %v354_v50 = vld [vmem:[%s1663_s24 + $0x200] sm:$0xff]  ;;  %v355_v51 = vld [vmem:[%s1663_s24 + $0x208] sm:$0xff] }
  0x9e   : > { %v277_v48 = vmul.f32 %v258_v44, %v1669_v0  ;;  %v405_v58 = vld [vmem:[%s1663_s24 + $0x398] sm:$0xff]  ;;  %v1092_v60 = vpack.c.bf16 %v355_v51, %v354_v50  ;;  %v388_v9 = vld [vmem:[%s1663_s24 + $0x310] sm:$0xff]  ;;  %v374_v11 = vld [vmem:[%s1663_s24 + $0x2a0] sm:$0xff] }
  0x9f   : > { %v389_v10 = vld [vmem:[%s1663_s24 + $0x318] sm:$0xff]  ;;  %v375_v12 = vld [vmem:[%s1663_s24 + $0x2a8] sm:$0xff]  ;;  %v406_v13 = vld [vmem:[%s1663_s24 + $0x3a0] sm:$0xff] }
  0xa0   : > { %v407_v14 = vld [vmem:[%s1663_s24 + $0x3a8] sm:$0xff]  ;;  %v390_v21 = vld [vmem:[%s1663_s24 + $0x320] sm:$0xff]  ;;  %v376_v23 = vld [vmem:[%s1663_s24 + $0x2b0] sm:$0xff] }
  0xa1   : > { %v359_v20 = vld [vmem:[%s1663_s24 + $0x228] sm:$0xff]  ;;  %v377_v24 = vld [vmem:[%s1663_s24 + $0x2b8] sm:$0xff]  ;;  %v408_v25 = vld [vmem:[%s1663_s24 + $0x3b0] sm:$0xff] }
  0xa2   : > { %v391_v22 = vld [vmem:[%s1663_s24 + $0x328] sm:$0xff]  ;;  %v409_v26 = vld [vmem:[%s1663_s24 + $0x3b8] sm:$0xff]  ;;  %v392_v33 = vld [vmem:[%s1663_s24 + $0x330] sm:$0xff] }
  0xa3   : > { %1041 = vmatpush3.bf16.xpose.msra.mxu0 %v1040_v53  ;;  %v386_v53 = vld [vmem:[%s1663_s24 + $0x300] sm:$0xff]  ;;  %v361_v32 = vld [vmem:[%s1663_s24 + $0x238] sm:$0xff]  ;;  %v411_v38 = vld [vmem:[%s1663_s24 + $0x3c8] sm:$0xff] }
  0xa4   : > { %1073 = vmatpush3.bf16.xpose.msra.mxu1 %v1072_v54  ;;  %1043 = vmatprep.subr.bf16.mxu0 %v1042_v55  ;;  %v387_v54 = vld [vmem:[%s1663_s24 + $0x308] sm:$0xff]  ;;  %v372_v55 = vld [vmem:[%s1663_s24 + $0x290] sm:$0xff]  ;;  %v393_v34 = vld [vmem:[%s1663_s24 + $0x338] sm:$0xff] }
  0xa5   : > { %1075 = vmatprep.subr.bf16.mxu1 %v1074_v56  ;;  %v1124_v61 = vpack.c.bf16 %v387_v54, %v386_v53  ;;  %v378_v35 = vld [vmem:[%s1663_s24 + $0x2c0] sm:$0xff]  ;;  %v1136_v40 = vpack.c.bf16 %v393_v34, %v392_v33  ;;  %v413_v50 = vld [vmem:[%s1663_s24 + $0x3d8] sm:$0xff] }
  0xab   : > { %1045 = vmatpush3.bf16.xpose.msra.mxu0 %v1044_v4 }
  0xac   : > { %1077 = vmatpush3.bf16.xpose.msra.mxu1 %v1076_v5  ;;  %1047 = vmatprep.subr.bf16.mxu0 %v1046_v6  ;;  %v356_v6 = vld [vmem:[%s1663_s24 + $0x210] sm:$0xff] }
  0xad   : > { %1079 = vmatprep.subr.bf16.mxu1 %v1078_v7  ;;  %v357_v7 = vld [vmem:[%s1663_s24 + $0x218] sm:$0xff] }
  0xae   : > { %v1096_v15 = vpack.c.bf16 %v357_v7, %v356_v6  ;;  %v398_v6 = vld [vmem:[%s1663_s24 + $0x360] sm:$0xff]  ;;  %v399_v7 = vld [vmem:[%s1663_s24 + $0x368] sm:$0xff] }
  0xb3   : > { %1049 = vmatpush3.bf16.xpose.msra.mxu0 %v1048_v16  ;;  %v1128_v16 = vpack.c.bf16 %v389_v10, %v388_v9  ;;  %v384_v9 = vld [vmem:[%s1663_s24 + $0x2f0] sm:$0xff]  ;;  %v385_v10 = vld [vmem:[%s1663_s24 + $0x2f8] sm:$0xff] }
  0xb4   : > { %1081 = vmatpush3.bf16.xpose.msra.mxu1 %v1080_v17  ;;  %1051 = vmatprep.subr.bf16.mxu0 %v1050_v18  ;;  %v1098_v17 = vpack.c.bf16 %v375_v12, %v374_v11  ;;  %v1130_v18 = vpack.c.bf16 %v407_v14, %v406_v13  ;;  %v416_v11 = vld [vmem:[%s1663_s24 + $0x3f0] sm:$0xff]  ;;  %v417_v12 = vld [vmem:[%s1663_s24 + $0x3f8] sm:$0xff]  ;;  %v1148_v14 = vpack.c.bf16 %v399_v7, %v398_v6 }
  0xb5   : > { %1083 = vmatprep.subr.bf16.mxu1 %v1082_v19  ;;  %v358_v19 = vld [vmem:[%s1663_s24 + $0x220] sm:$0xff] }
  0xb6   : > { %v1100_v27 = vpack.c.bf16 %v359_v20, %v358_v19  ;;  %v400_v19 = vld [vmem:[%s1663_s24 + $0x370] sm:$0xff]  ;;  %v401_v20 = vld [vmem:[%s1663_s24 + $0x378] sm:$0xff] }
  0xbb   : > { %1053 = vmatpush3.bf16.xpose.msra.mxu0 %v1052_v28  ;;  %v1132_v28 = vpack.c.bf16 %v391_v22, %v390_v21  ;;  %v1152_v22 = vpack.c.bf16 %v401_v20, %v400_v19 }
  0xbc   : > { %1085 = vmatpush3.bf16.xpose.msra.mxu1 %v1084_v29  ;;  %1055 = vmatprep.subr.bf16.mxu0 %v1054_v30  ;;  %v1102_v29 = vpack.c.bf16 %v377_v24, %v376_v23  ;;  %v1134_v30 = vpack.c.bf16 %v409_v26, %v408_v25 }
  0xbd   : > { %1087 = vmatprep.subr.bf16.mxu1 %v1086_v31  ;;  %v360_v31 = vld [vmem:[%s1663_s24 + $0x230] sm:$0xff] }
  0xbe   : > { %v1104_v39 = vpack.c.bf16 %v361_v32, %v360_v31 }
  0xc3   : > { %1057 = vmatpush3.bf16.xpose.msra.mxu0 %v1056_v36  ;;  %v379_v36 = vld [vmem:[%s1663_s24 + $0x2c8] sm:$0xff] }
  0xc4   : > { %1089 = vmatpush3.bf16.xpose.msra.mxu1 %v1088_v37  ;;  %1091 = vmatprep.subr.bf16.mxu0 %v1090_v41  ;;  %v410_v37 = vld [vmem:[%s1663_s24 + $0x3c0] sm:$0xff]  ;;  %v1106_v41 = vpack.c.bf16 %v379_v36, %v378_v35 }
  0xc5   : > { %1123 = vmatprep.subr.bf16.mxu1 %v1122_v43  ;;  %v1138_v42 = vpack.c.bf16 %v411_v38, %v410_v37  ;;  %v362_v43 = vld [vmem:[%s1663_s24 + $0x240] sm:$0xff] }
  0xf8   : > { %v267_v45 = vpop.permute.xlu0 %266 }
  0xf9   : > { %v283_v46 = vmul.f32 %v267_v45, %v258_v44  ;;  %v269_v47 = vmul.f32 %v267_v45, %v1671_v1  ;;  %v373_v1 = vld [vmem:[%s1663_s24 + $0x298] sm:$0xff]  ;;  %v363_v44 = vld [vmem:[%s1663_s24 + $0x248] sm:$0xff]  ;;  %v394_v45 = vld [vmem:[%s1663_s24 + $0x340] sm:$0xff] }
  0xfa   : > { %v1094_v63 = vpack.c.bf16 %v373_v1, %v372_v55  ;;  %v1108_v51 = vpack.c.bf16 %v363_v44, %v362_v43  ;;  %v364_v55 = vld [vmem:[%s1663_s24 + $0x250] sm:$0xff] }
  0xfb   : > { %271 = vrot.lane.b32.xlu1 %v269_v47, %s1432_s26  ;;  %285 = vrot.lane.b32.xlu0 %v283_v46, %s1432_s26  ;;  %v396_v1 = vld [vmem:[%s1663_s24 + $0x350] sm:$0xff] }
  0xfc   : > { %v262_v49 = vpop.permute.xlu0 %261 }
  0xfd   : > { %v264_v52 = vsub.f32 %v1677_v2, %v262_v49  ;;  %v1126_v2 = vpack.c.bf16 %v405_v58, %v404_v57  ;;  %v412_v49 = vld [vmem:[%s1663_s24 + $0x3d0] sm:$0xff]  ;;  %v397_v57 = vld [vmem:[%s1663_s24 + $0x358] sm:$0xff]  ;;  %v382_v58 = vld [vmem:[%s1663_s24 + $0x2e0] sm:$0xff] }
  0xfe   : > { %v1142_v54 = vpack.c.bf16 %v413_v50, %v412_v49 }
  0xff   : > { %279 = vrot.lane.b32.xlu1 %v277_v48, %s1432_s26 }
 0x16d   : > { %v272_v56 = vpop.permute.xlu1 %271  ;;  %v286_v59 = vpop.permute.xlu0 %285 }
 0x16e   : > { %v274_v0 = vadd.f32 %v272_v56, %v269_v47  ;;  %v288_v4 = vsub.f32 %v283_v46, %v286_v59  ;;  %v395_v46 = vld [vmem:[%s1663_s24 + $0x348] sm:$0xff]  ;;  %v380_v47 = vld [vmem:[%s1663_s24 + $0x2d0] sm:$0xff]  ;;  %v365_v56 = vld [vmem:[%s1663_s24 + $0x258] sm:$0xff] }
 0x16f   : > { %v414_v59 = vld [vmem:[%s1663_s24 + $0x3e0] sm:$0xff] }
 0x170   : > { %v1764_v62 = vsel %vm275_vm0, %v264_v52, %v274_v0  ;;  %v1140_v52 = vpack.c.bf16 %v395_v46, %v394_v45  ;;  %v383_v0 = vld [vmem:[%s1663_s24 + $0x2e8] sm:$0xff] }
 0x171   : > { %v280_v3 = vpop.permute.xlu1 %279  ;;  %914 = vmatprep.mubr.f32.mxu0 %v1764_v62  ;;  %950 = vmatprep.mubr.f32.mxu1 %v1764_v62 }
 0x172   : > { %v282_v5 = vadd.f32 %v280_v3, %v277_v48  ;;  %915 = vmatmul.mubr.f32.vlgmr.msra.gmra.mrb[0].mxu0 %v1764_v62  ;;  %951 = vmatmul.mubr.f32.vlgmr.msra.gmra.mrb[0].mxu1 %v1764_v62  ;;  %v381_v48 = vld [vmem:[%s1663_s24 + $0x2d8] sm:$0xff] }
 0x173   : > { %1093 = vmatpush3.bf16.xpose.msra.mxu0 %v1092_v60  ;;  %1125 = vmatpush3.bf16.xpose.msra.mxu1 %v1124_v61  ;;  %v1110_v53 = vpack.c.bf16 %v381_v48, %v380_v47  ;;  %v415_v60 = vld [vmem:[%s1663_s24 + $0x3e8] sm:$0xff]  ;;  %v1112_v61 = vpack.c.bf16 %v365_v56, %v364_v55 }
 0x174   : > { %v1773_v8 = vsel %vm275_vm0, %v282_v5, %v288_v4  ;;  %1095 = vmatprep.subr.bf16.mxu0 %v1094_v63  ;;  %1127 = vmatprep.subr.bf16.mxu1 %v1126_v2  ;;  %v1144_v63 = vpack.c.bf16 %v397_v57, %v396_v1  ;;  %v1114_v2 = vpack.c.bf16 %v383_v0, %v382_v58  ;;  %v366_v4 = vld [vmem:[%s1663_s24 + $0x260] sm:$0xff]  ;;  %v367_v5 = vld [vmem:[%s1663_s24 + $0x268] sm:$0xff] }
 0x175   : > { %916 = vmatprep.mubr.f32.mxu0 %v1773_v8  ;;  %952 = vmatprep.mubr.f32.mxu1 %v1773_v8  ;;  %v1146_v3 = vpack.c.bf16 %v415_v60, %v414_v59  ;;  %v1116_v13 = vpack.c.bf16 %v367_v5, %v366_v4 }
 0x176   : > { %917 = vmatmul.mubr.f32.gmra.mrb[2].mxu0 %v1773_v8  ;;  %953 = vmatmul.mubr.f32.gmra.mrb[2].mxu1 %v1773_v8 }
 0x177   : > { %986 = vmatprep.mubr.f32.mxu0 %v1764_v62  ;;  %1022 = vmatprep.mubr.f32.mxu1 %v1764_v62 }
 0x17b   : > { %1097 = vmatpush3.bf16.xpose.msra.mxu0 %v1096_v15  ;;  %1129 = vmatpush3.bf16.xpose.msra.mxu1 %v1128_v16  ;;  %v1118_v15 = vpack.c.bf16 %v385_v10, %v384_v9  ;;  %v1150_v16 = vpack.c.bf16 %v417_v12, %v416_v11 }
 0x17c   : > { %1099 = vmatprep.subr.bf16.mxu0 %v1098_v17  ;;  %1131 = vmatprep.subr.bf16.mxu1 %v1130_v18  ;;  %v368_v17 = vld [vmem:[%s1663_s24 + $0x270] sm:$0xff]  ;;  %v369_v18 = vld [vmem:[%s1663_s24 + $0x278] sm:$0xff] }
 0x17d   : > { %v1120_v21 = vpack.c.bf16 %v369_v18, %v368_v17 }
 0x183   : > { %1101 = vmatpush3.bf16.xpose.msra.mxu0 %v1100_v27  ;;  %1133 = vmatpush3.bf16.xpose.msra.mxu1 %v1132_v28 }
 0x184   : > { %1103 = vmatprep.subr.bf16.mxu0 %v1102_v29  ;;  %1135 = vmatprep.subr.bf16.mxu1 %v1134_v30 }
 0x18b   : > { %1105 = vmatpush3.bf16.xpose.msra.mxu0 %v1104_v39  ;;  %1137 = vmatpush3.bf16.xpose.msra.mxu1 %v1136_v40 }
 0x18c   : > { %1107 = vmatprep.subr.bf16.mxu0 %v1106_v41  ;;  %1139 = vmatprep.subr.bf16.mxu1 %v1138_v42 }
 0x193   : > { %1109 = vmatpush3.bf16.xpose.msra.mxu0 %v1108_v51  ;;  %1141 = vmatpush3.bf16.xpose.msra.mxu1 %v1140_v52 }
 0x194   : > { %1111 = vmatprep.subr.bf16.mxu0 %v1110_v53  ;;  %1143 = vmatprep.subr.bf16.mxu1 %v1142_v54 }
 0x19b   : > { %1113 = vmatpush3.bf16.xpose.msra.mxu0 %v1112_v61  ;;  %1145 = vmatpush3.bf16.xpose.msra.mxu1 %v1144_v63 }
 0x19c   : > { %1115 = vmatprep.subr.bf16.mxu0 %v1114_v2  ;;  %1147 = vmatprep.subr.bf16.mxu1 %v1146_v3 }
 0x1a3   : > { %1117 = vmatpush3.bf16.xpose.msra.mxu0 %v1116_v13  ;;  %1149 = vmatpush3.bf16.xpose.msra.mxu1 %v1148_v14 }
 0x1a4   : > { %1119 = vmatprep.subr.bf16.mxu0 %v1118_v15  ;;  %1151 = vmatprep.subr.bf16.mxu1 %v1150_v16 }
 0x1ab   : > { %1121 = vmatpush3.bf16.xpose.msra.mxu0 %v1120_v21  ;;  %1153 = vmatpush3.bf16.xpose.msra.mxu1 %v1152_v22 }
 0x1b2   : > { %987 = vmatmul.mubr.f32.vlgmr.msra.gmra.mrb[4].mxu0 %v1764_v62  ;;  %1023 = vmatmul.mubr.f32.vlgmr.msra.gmra.mrb[4].mxu1 %v1764_v62 }
 0x1b3   : > { %988 = vmatprep.mubr.f32.mxu0 %v1773_v8  ;;  %1024 = vmatprep.mubr.f32.mxu1 %v1773_v8 }
 0x1b6   : > { %989 = vmatmul.mubr.f32.gmra.mrb[6].mxu0 %v1773_v8  ;;  %1025 = vmatmul.mubr.f32.gmra.mrb[6].mxu1 %v1773_v8 }
 0x245   : > { %v484_v23 = vpop.f32.mrb[0].mxu0  ;;  %v561_v24 = vpop.f32.mrb[0].mxu1 }
 0x246   : > { %726 = vst [vmem:[%s1838_s29] sm:$0xff] %v484_v23  ;;  %728 = vst [vmem:[%s1838_s29 + $0x10] sm:$0xff] %v561_v24  ;;  %v486_v62 = vpop.f32.mrb[1].mxu0  ;;  %v563_v8 = vpop.f32.mrb[1].mxu1 }
 0x247   : > { %727 = vst [vmem:[%s1838_s29 + $0x8] sm:$0xff] %v486_v62  ;;  %729 = vst [vmem:[%s1838_s29 + $0x18] sm:$0xff] %v563_v8 }
 0x249   : > { %v490_v25 = vpop.f32.mrb[2].mxu0  ;;  %v567_v26 = vpop.f32.mrb[2].mxu1 }
 0x24a   : > { %734 = vst [vmem:[%s1838_s29 + $0x40] sm:$0xff] %v490_v25  ;;  %736 = vst [vmem:[%s1838_s29 + $0x50] sm:$0xff] %v567_v26  ;;  %v492_v27 = vpop.f32.mrb[3].mxu0  ;;  %v569_v28 = vpop.f32.mrb[3].mxu1 }
 0x24b   : > { %735 = vst [vmem:[%s1838_s29 + $0x48] sm:$0xff] %v492_v27  ;;  %737 = vst [vmem:[%s1838_s29 + $0x58] sm:$0xff] %v569_v28 }
 0x285   : > { %v638_v29 = vpop.f32.mrb[4].mxu0  ;;  %v715_v30 = vpop.f32.mrb[4].mxu1 }
 0x286   : > { %730 = vst [vmem:[%s1838_s29 + $0x20] sm:$0xff] %v638_v29  ;;  %732 = vst [vmem:[%s1838_s29 + $0x30] sm:$0xff] %v715_v30  ;;  %v640_v31 = vpop.f32.mrb[5].mxu0  ;;  %v717_v32 = vpop.f32.mrb[5].mxu1 }
 0x287   : > { %731 = vst [vmem:[%s1838_s29 + $0x28] sm:$0xff] %v640_v31  ;;  %733 = vst [vmem:[%s1838_s29 + $0x38] sm:$0xff] %v717_v32 }
 0x289   : > { %v644_v33 = vpop.f32.mrb[6].mxu0  ;;  %v721_v34 = vpop.f32.mrb[6].mxu1 }
 0x28a   : > { %738 = vst [vmem:[%s1838_s29 + $0x60] sm:$0xff] %v644_v33  ;;  %740 = vst [vmem:[%s1838_s29 + $0x70] sm:$0xff] %v721_v34  ;;  %v646_v35 = vpop.f32.mrb[7].mxu0  ;;  %v723_v36 = vpop.f32.mrb[7].mxu1 }
 0x28b   : > { %739 = vst [vmem:[%s1838_s29 + $0x68] sm:$0xff] %v646_v35  ;;  %741 = vst [vmem:[%s1838_s29 + $0x78] sm:$0xff] %v723_v36 }
 0x28c   : > { %1363 = shalt.err (!%p1360_p13)
}
 0x28d   : > { %s1364_s27 = scalar_lea.hbm %s1857_s9, 2048  ;;  %s1368_s24 = scalar_lea.hbm %s1912_s4, 4096 }
 0x28e   : > { %p1365_p0 = scmp.ne.s32.totalorder %s1857_s9, %s1364_s27  ;;  %p1369_p12 = scmp.lt.u32.totalorder %s1857_s9, %s1912_s4 }
 0x28f   : > { %p1370_p2 = scmp.lt.u32.totalorder %s1368_s24, %s1364_s27  ;;  %p1372_p1 = scmp.lt.u32.totalorder %s1364_s27, %s1857_s9 }
 0x290   : > { %p1366_p5 = pnand %p1365_p0, %p1603_p6 }
 0x291   : > { %p1371_p11 = por %p1370_p2, %p1369_p12 }
 0x292   : > { %p1367_p9 = pneg %p1366_p5 }
 0x293   : > { %p1373_p4 = por %p1372_p1, %p1371_p11 }
 0x295   : > { %p1374_p8 = pnand %p1373_p4, %p1367_p9 }
 0x297   : > { %1377 = shalt.err (!%p1374_p8)
}
 0x298   : > { %s1434_s6 = smov 1024   ;;  %s1435_s7 = smov 2048  }
 0x299   : > { %1168 = dma.vmem_to_hbm [thread:$0]  (%p1603_p6), %s1859_s28, 2048, %s1857_s9, %s743_s19, %s1434_s6, %s1435_s7, %s1432_s26  }
 0x29a PF: > { %s771_s11 = sand.u32 1, %s1412_s15   ;;  %p1930_p3 = scmp.ne.s32.totalorder %s1917_s22, 0 }
 0x29b   : > { %p1931_p7 = scmp.ge.s32.totalorder %s1424_s18, 2  ;;  %s772_s30 = scalar_lea.sflag [#allocation4], %s771_s11 }
 0x29d   : > { %p1185_p10 = pnand %p1931_p7, %p1930_p3 }
 0x29f   : > { %1407 = dma.done.wait (!%p1185_p10), %s772_s30, 2048  }
 0x2a0   : > { %1409 = vsyncadd (!%p1185_p10), %s772_s30, 4294965248  ;;  %p19_p13 = scmp.ge.s32.totalorder %s1589_s10, 4   ;;  %s1932_s15 = smov %s1416_s16 }
 0x2a1   : > { %s1933_s16 = smov %s1420_s17  ;;  %s1934_s17 = smov %s1599_s8 }
 0x2a2   : > { %s1935_s18 = smov %s1589_s10  ;;  %21 = sbr.rel (!%p19_p13) target bundleno = 7 (0x7), region = 94 }
 0x2a9   :  { %777 = vsyncpa [#allocation3], 1 }
 0x2aa   :  { %779 = vsyncpa [#allocation3 + $0x1], 1 }
 0x2ab   :  { %780 = vsyncpa [#allocation6], 1 }
 0x2ac   :  { %781 = vsyncpa [#allocation9], 1 }
 0x2ad   :  { %783 = vsyncpa [#allocation9 + $0x1], 1 }
 0x2ae   :  { %784 = vsyncpa [#allocation4], 1 }
 0x2af   :  { %786 = vsyncpa [#allocation4 + $0x1], 1 }

</bundles_post_ra>
